<compile_context>
chip_gen: v7x
topology: tpu7x:2x2x1
jax: 0.10.0
libtpu: 0.0.40
codegen_flags: <defaults>
</compile_context>

<pallas_src>
import functools

import jax
import jax.numpy as jnp
from jax.experimental import pallas as pl
from jax.experimental.pallas import tpu as pltpu

HIDDEN = 128
LANE = 128
SUBLANE = 8


def _round_up(x, m):
    return ((x + m - 1) // m) * m


def actor_mlp_kernel(x_ref, w1_ref, b1_ref, w2_ref, b2_ref, o_ref):
    # x_ref:  (tile_b, K_pad)    VMEM (bf16 or f32), pipelined over the batch grid
    # w1_ref: (K_pad, HIDDEN)    VMEM, resident across grid (constant index_map)
    # b1_ref: (1, HIDDEN)        VMEM f32
    # w2_ref: (HIDDEN, A_pad)    VMEM, resident across grid
    # b2_ref: (1, A_pad)         VMEM f32
    # o_ref:  (tile_b, A_pad)    VMEM f32 (A_pad % 128 == 0 -> unmasked lane-dense vst)
    h = jnp.dot(x_ref[...], w1_ref[...], preferred_element_type=jnp.float32)
    h = jnp.maximum(h + b1_ref[...], 0.0)           # bias + ReLU in f32 on the VPU
    h = h.astype(w2_ref.dtype)                      # feed second MXU matmul in operand dtype
    y = jnp.dot(h, w2_ref[...], preferred_element_type=jnp.float32)
    o_ref[...] = jnp.maximum(y + b2_ref[...], 0.0)  # final ReLU, lane-dense store


def _pick_tile_b(B):
    """Batch tile: sublane-aligned, capped at 256, and >= 2 grid steps when B allows."""
    if B <= SUBLANE:
        return SUBLANE
    tile = min(_round_up(B, SUBLANE), 256)
    if B > tile:                      # already >= 2 tiles
        return tile
    # B fits in one <=256 tile: split in two (still sublane-aligned) so the
    # grid can shard across TensorCores and pipeline obs/out DMA.
    half = _round_up((B + 1) // 2, SUBLANE)
    return max(SUBLANE, half)


@functools.partial(jax.jit, static_argnames=("tile_b", "use_bf16"))
def actor_forward(obs, w1, b1, w2, b2, *, tile_b=None, use_bf16=True):
    """obs: [B, num_obs] f32.  w1: [num_obs, 128], b1: [128], w2: [128, A], b2: [A]."""
    B, num_obs = obs.shape
    assert w1.shape == (num_obs, HIDDEN)
    num_actions = w2.shape[1]

    if tile_b is None:
        tile_b = _pick_tile_b(B)
    tile_b = max(SUBLANE, _round_up(tile_b, SUBLANE))
    B_pad = _round_up(max(B, tile_b), tile_b)

    # Pad feature axis to a sublane multiple, action axis to a lane multiple.
    K_pad = _round_up(num_obs, SUBLANE)
    A_pad = _round_up(num_actions, LANE)

    in_dtype = jnp.bfloat16 if use_bf16 else jnp.float32

    obs_p = jnp.zeros((B_pad, K_pad), in_dtype).at[:B, :num_obs].set(obs.astype(in_dtype))
    w1_p = jnp.zeros((K_pad, HIDDEN), in_dtype).at[:num_obs, :].set(w1.astype(in_dtype))
    w2_p = jnp.zeros((HIDDEN, A_pad), in_dtype).at[:, :num_actions].set(w2.astype(in_dtype))
    b1_p = b1.reshape(1, HIDDEN).astype(jnp.float32)
    b2_p = jnp.zeros((1, A_pad), jnp.float32).at[:, :num_actions].set(b2.astype(jnp.float32))

    grid = (B_pad // tile_b,)

    itemsize = jnp.dtype(in_dtype).itemsize
    bytes_accessed = (B_pad * K_pad * itemsize            # obs
                      + K_pad * HIDDEN * itemsize         # W1
                      + HIDDEN * A_pad * itemsize         # W2
                      + (HIDDEN + A_pad) * 4              # biases
                      + B_pad * A_pad * 4)                # output
    cost = pl.CostEstimate(
        flops=2 * B_pad * (K_pad * HIDDEN + HIDDEN * A_pad),
        transcendentals=0,
        bytes_accessed=bytes_accessed,
    )

    out = pl.pallas_call(
        actor_mlp_kernel,
        out_shape=jax.ShapeDtypeStruct((B_pad, A_pad), jnp.float32),
        grid_spec=pl.GridSpec(
            grid=grid,
            in_specs=[
                pl.BlockSpec((tile_b, K_pad), lambda i: (i, 0)),       # obs tile (pipelined)
                pl.BlockSpec((K_pad, HIDDEN), lambda i: (0, 0)),       # W1 (VMEM resident)
                pl.BlockSpec((1, HIDDEN), lambda i: (0, 0)),           # b1
                pl.BlockSpec((HIDDEN, A_pad), lambda i: (0, 0)),       # W2 (VMEM resident)
                pl.BlockSpec((1, A_pad), lambda i: (0, 0)),            # b2
            ],
            out_specs=pl.BlockSpec((tile_b, A_pad), lambda i: (i, 0)),
        ),
        compiler_params=pltpu.CompilerParams(
            dimension_semantics=("parallel",),   # independent batch tiles (megacore-shardable)
        ),
        cost_estimate=cost,
    )(obs_p, w1_p, b1_p, w2_p, b2_p)

    return out[:B, :num_actions]


def init_params(key, num_observations, num_actions):
    """Init mirroring nn.Linear default: U(-1/sqrt(fan_in), +1/sqrt(fan_in))."""
    k1, k2, k3, k4 = jax.random.split(key, 4)
    bound1 = 1.0 / jnp.sqrt(jnp.float32(num_observations))
    bound2 = 1.0 / jnp.sqrt(jnp.float32(HIDDEN))
    # Stored as [in, out] (transposed relative to PyTorch's [out, in]).
    w1 = jax.random.uniform(k1, (num_observations, HIDDEN), jnp.float32, -bound1, bound1)
    b1 = jax.random.uniform(k2, (HIDDEN,), jnp.float32, -bound1, bound1)
    w2 = jax.random.uniform(k3, (HIDDEN, num_actions), jnp.float32, -bound2, bound2)
    b2 = jax.random.uniform(k4, (num_actions,), jnp.float32, -bound2, bound2)
    return w1, b1, w2, b2


def actor_forward_ref(obs, w1, b1, w2, b2):
    h = jnp.maximum(obs @ w1 + b1, 0.0)
    return jnp.maximum(h @ w2 + b2, 0.0)


if __name__ == "__main__":
    key = jax.random.PRNGKey(0)
    num_observations = 4   # e.g. CartPole observation dim
    num_actions = 2
    batch = 32             # small batch; auto tile split still gives a 2-step grid

    k_obs, k_params = jax.random.split(key)
    obs = jax.random.normal(k_obs, (batch, num_observations), jnp.float32)
    w1, b1, w2, b2 = init_params(k_params, num_observations, num_actions)

    ref = actor_forward_ref(obs, w1, b1, w2, b2)

    # Full-f32 path: tight check against the JAX reference.
    out_f32 = jax.block_until_ready(actor_forward(obs, w1, b1, w2, b2, use_bf16=False))
    assert out_f32.shape == (batch, num_actions)
    assert jnp.allclose(out_f32, ref, atol=1e-5, rtol=1e-5), "f32 path mismatch vs JAX reference"

    # Default bf16-operand / f32-accumulate path: looser tolerance (bf16 inputs).
    out_bf16 = jax.block_until_ready(actor_forward(obs, w1, b1, w2, b2))
    assert out_bf16.shape == (batch, num_actions)
    assert jnp.allclose(out_bf16, ref, atol=2e-2, rtol=2e-2), "bf16 path mismatch vs JAX reference"

    # Tiny-batch path (grid of 1, B padded to a sublane multiple).
    out_tiny = jax.block_until_ready(
        actor_forward(obs[:2], w1, b1, w2, b2, tile_b=8, use_bf16=False))
    assert out_tiny.shape == (2, num_actions)
    assert jnp.allclose(out_tiny, ref[:2], atol=1e-5, rtol=1e-5), "tiny-batch path mismatch"

    print("KERNEL_OK")
</pallas_src>

<mosaic_0001>
module attributes {stable_mosaic.version = 11 : i64} {
  func.func @actor_mlp_kernel(%arg0: i32, %arg1: memref<16x8xf32, #tpu.memory_space<vmem>>, %arg2: memref<8x128xf32, #tpu.memory_space<vmem>>, %arg3: memref<1x128xf32, #tpu.memory_space<vmem>>, %arg4: memref<128x128xf32, #tpu.memory_space<vmem>>, %arg5: memref<1x128xf32, #tpu.memory_space<vmem>>, %arg6: memref<16x128xf32, #tpu.memory_space<vmem>>) attributes {dimension_semantics = [#tpu.dimension_semantics<parallel>], iteration_bounds = array<i64: 2>, scalar_prefetch = 0 : i64, scratch_operands = 0 : i64, tpu.core_type = #tpu.core_type<tc>, window_params = [{transform_indices = @transform_0, window_bounds = array<i64: 16, 8>}, {pipeline_mode = #tpu.pipeline_mode<synchronous>, transform_indices = @transform_1, window_bounds = array<i64: 8, 128>}, {pipeline_mode = #tpu.pipeline_mode<synchronous>, transform_indices = @transform_2, window_bounds = array<i64: 1, 128>}, {pipeline_mode = #tpu.pipeline_mode<synchronous>, transform_indices = @transform_3, window_bounds = array<i64: 128, 128>}, {pipeline_mode = #tpu.pipeline_mode<synchronous>, transform_indices = @transform_4, window_bounds = array<i64: 1, 128>}, {transform_indices = @transform_5, window_bounds = array<i64: 16, 128>}]} {
    %c0 = arith.constant 0 : index
    %c0_0 = arith.constant 0 : index
    %0 = vector.load %arg1[%c0, %c0_0] : memref<16x8xf32, #tpu.memory_space<vmem>>, vector<16x8xf32>
    %c0_1 = arith.constant 0 : index
    %c0_2 = arith.constant 0 : index
    %1 = vector.load %arg2[%c0_1, %c0_2] : memref<8x128xf32, #tpu.memory_space<vmem>>, vector<8x128xf32>
    %cst = arith.constant dense<0.000000e+00> : vector<16x128xf32>
    %2 = tpu.matmul %0, %1, %cst {dimension_numbers = #tpu.dot_dimension_numbers<[1], [0], [0], [1], [0, 0, 1, 1], [], []>} : vector<16x8xf32>, vector<8x128xf32>, vector<16x128xf32> -> vector<16x128xf32>
    %c0_3 = arith.constant 0 : index
    %c0_4 = arith.constant 0 : index
    %3 = vector.load %arg3[%c0_3, %c0_4] : memref<1x128xf32, #tpu.memory_space<vmem>>, vector<1x128xf32>
    %4 = vector.broadcast %3 : vector<1x128xf32> to vector<16x128xf32>
    %5 = arith.addf %2, %4 : vector<16x128xf32>
    %cst_5 = arith.constant 0.000000e+00 : f32
    %6 = vector.broadcast %cst_5 : f32 to vector<16x128xf32>
    %7 = arith.maximumf %5, %6 : vector<16x128xf32>
    %c0_6 = arith.constant 0 : index
    %c0_7 = arith.constant 0 : index
    %8 = vector.load %arg4[%c0_6, %c0_7] : memref<128x128xf32, #tpu.memory_space<vmem>>, vector<128x128xf32>
    %cst_8 = arith.constant dense<0.000000e+00> : vector<16x128xf32>
    %9 = tpu.matmul %7, %8, %cst_8 {dimension_numbers = #tpu.dot_dimension_numbers<[1], [0], [0], [1], [0, 0, 1, 1], [], []>} : vector<16x128xf32>, vector<128x128xf32>, vector<16x128xf32> -> vector<16x128xf32>
    %c0_9 = arith.constant 0 : index
    %c0_10 = arith.constant 0 : index
    %10 = vector.load %arg5[%c0_9, %c0_10] : memref<1x128xf32, #tpu.memory_space<vmem>>, vector<1x128xf32>
    %11 = vector.broadcast %10 : vector<1x128xf32> to vector<16x128xf32>
    %12 = arith.addf %9, %11 : vector<16x128xf32>
    %cst_11 = arith.constant 0.000000e+00 : f32
    %13 = vector.broadcast %cst_11 : f32 to vector<16x128xf32>
    %14 = arith.maximumf %12, %13 : vector<16x128xf32>
    %c0_12 = arith.constant 0 : index
    %c0_13 = arith.constant 0 : index
    %15 = vector.load %arg6[%c0_12, %c0_13] : memref<16x128xf32, #tpu.memory_space<vmem>>, vector<16x128xf32>
    tpu.vector_store %arg6[%c0_12, %c0_13], %14 {strides = array<i32>} : memref<16x128xf32, #tpu.memory_space<vmem>>, vector<16x128xf32>,
    return
  }
  func.func @transform_0(%arg0: i32) -> (i32, i32) {
    %c0_i32 = arith.constant 0 : i32
    %c0_i32_0 = arith.constant 0 : i32
    return %arg0, %c0_i32 : i32, i32
  }
  func.func @transform_1(%arg0: i32) -> (i32, i32) {
    %c0_i32 = arith.constant 0 : i32
    %c0_i32_0 = arith.constant 0 : i32
    %c0_i32_1 = arith.constant 0 : i32
    return %c0_i32, %c0_i32_0 : i32, i32
  }
  func.func @transform_2(%arg0: i32) -> (i32, i32) {
    %c0_i32 = arith.constant 0 : i32
    %c0_i32_0 = arith.constant 0 : i32
    %c0_i32_1 = arith.constant 0 : i32
    return %c0_i32, %c0_i32_0 : i32, i32
  }
  func.func @transform_3(%arg0: i32) -> (i32, i32) {
    %c0_i32 = arith.constant 0 : i32
    %c0_i32_0 = arith.constant 0 : i32
    %c0_i32_1 = arith.constant 0 : i32
    return %c0_i32, %c0_i32_0 : i32, i32
  }
  func.func @transform_4(%arg0: i32) -> (i32, i32) {
    %c0_i32 = arith.constant 0 : i32
    %c0_i32_0 = arith.constant 0 : i32
    %c0_i32_1 = arith.constant 0 : i32
    return %c0_i32, %c0_i32_0 : i32, i32
  }
  func.func @transform_5(%arg0: i32) -> (i32, i32) {
    %c0_i32 = arith.constant 0 : i32
    %c0_i32_0 = arith.constant 0 : i32
    return %arg0, %c0_i32 : i32, i32
  }
}

</mosaic_0001>

<bundles_post_ra>
// kernel: actor_forward.1
= control target key start
LH: loop header
LB: loop body
LE: loop exit
PB: predicated region body
PF: predicated region fallthrough
CT: control target
= control target key end

     0   :  { %s634_s18 = smov 0   ;;  %s715_s0 = inlined_call_operand.vmem [shape: f32[32,8], index: 0, kind: input, shape index: {}]   ;;  %s716_s1 = inlined_call_operand.vmem [shape: f32[8,128], index: 1, kind: input, shape index: {}]   ;;  %s717_s2 = inlined_call_operand.vmem [shape: f32[1,128], index: 2, kind: input, shape index: {}]   ;;  %s718_s3 = inlined_call_operand.vmem [shape: f32[128,128], index: 3, kind: input, shape index: {}]   ;;  %s719_s4 = inlined_call_operand.vmem [shape: f32[1,128], index: 4, kind: input, shape index: {}]   ;;  %s720_s5 = inlined_call_operand.vmem [shape: f32[32,128], index: 5, kind: output, shape index: {}]  }
   0x1 LB: > { %s480_s19 = sadd.s32 4294967295, %s602_s18   ;;  %p484_p0 = scmp.ge.s32.totalorder %s602_s18, 1  ;;  %s602_s18 = sphi %s634_s18, %s15_s18  }
   0x2   : > { %p188_p1 = scmp.lt.s32.totalorder %s602_s18, 3 }
   0x4   : > { %p189_p2 = pnand %p484_p0, %p188_p1 }
   0x5   : > { %v230_v0 = vld [vmem:[%s716_s1] sm:$0xff] (!%p189_p2)  ;;  %s485_s22 = sshll.u32 (!%p189_p2), %s480_s19, 1  ;;  %v323_v2 = vld [vmem:[%s718_s3 + $0x8] sm:$0xff] (!%p189_p2)  ;;  %v324_v4 = vld [vmem:[%s718_s3 + $0x10] sm:$0xff] (!%p189_p2)  ;;  %vm238_vm0 = vcmask (!%p189_p2), 64512  }
   0x6   : > { %192 = sbr.rel (%p189_p2) target bundleno = 454 (0x1c6), region = 40  ;;  %v322_v1 = vld [vmem:[%s718_s3] sm:$0xff] (!%p189_p2)  ;;  %516 = vmatprep.subr.mxu0 (!%p189_p2), %v230_v0  ;;  %p217_p3 = scmp.lt.s32.totalorder (!%p189_p2), %s485_s22, 3  ;;  %v325_v5 = vld [vmem:[%s718_s3 + $0x18] sm:$0xff] (!%p189_p2)  ;;  %v327_v8 = vld [vmem:[%s718_s3 + $0x28] sm:$0xff] (!%p189_p2) }
   0x7   : > { %v556_v3 = vpack.c.bf16 (!%p189_p2), %v323_v2, %v322_v1  ;;  %517 = vmatpush3.msra.mxu0 (!%p189_p2), %v230_v0  ;;  %v560_v6 = vpack.c.bf16 (!%p189_p2), %v325_v5, %v324_v4  ;;  %v326_v7 = vld [vmem:[%s718_s3 + $0x20] sm:$0xff] (!%p189_p2)  ;;  %v328_v10 = vld [vmem:[%s718_s3 + $0x30] sm:$0xff] (!%p189_p2)  ;;  %v329_v11 = vld [vmem:[%s718_s3 + $0x38] sm:$0xff] (!%p189_p2) }
   0x8   : > { %v564_v9 = vpack.c.bf16 (!%p189_p2), %v327_v8, %v326_v7  ;;  %v568_v14 = vpack.c.bf16 (!%p189_p2), %v329_v11, %v328_v10  ;;  %v330_v15 = vld [vmem:[%s718_s3 + $0x40] sm:$0xff] (!%p189_p2)  ;;  %v331_v16 = vld [vmem:[%s718_s3 + $0x48] sm:$0xff] (!%p189_p2)  ;;  %v332_v18 = vld [vmem:[%s718_s3 + $0x50] sm:$0xff] (!%p189_p2) }
   0x9   : > { %557 = vmatprep.subr.bf16.mxu1 (!%p189_p2), %v556_v3  ;;  %v572_v17 = vpack.c.bf16 (!%p189_p2), %v331_v16, %v330_v15  ;;  %v333_v19 = vld [vmem:[%s718_s3 + $0x58] sm:$0xff] (!%p189_p2)  ;;  %v334_v21 = vld [vmem:[%s718_s3 + $0x60] sm:$0xff] (!%p189_p2)  ;;  %v335_v22 = vld [vmem:[%s718_s3 + $0x68] sm:$0xff] (!%p189_p2) }
   0xa   : > { %559 = vmatpush3.bf16.msra.mxu1 (!%p189_p2), %v556_v3  ;;  %v576_v20 = vpack.c.bf16 (!%p189_p2), %v333_v19, %v332_v18  ;;  %v580_v23 = vpack.c.bf16 (!%p189_p2), %v335_v22, %v334_v21  ;;  %v336_v24 = vld [vmem:[%s718_s3 + $0x70] sm:$0xff] (!%p189_p2)  ;;  %v337_v25 = vld [vmem:[%s718_s3 + $0x78] sm:$0xff] (!%p189_p2)  ;;  %v489_v27 = vld [vmem:[%s717_s2] ss:$0 sm:$0xff] (!%p189_p2) }
   0xb   : > { %561 = vmatprep.subr.bf16.mxu1 (!%p189_p2), %v560_v6  ;;  %v584_v26 = vpack.c.bf16 (!%p189_p2), %v337_v25, %v336_v24  ;;  %v492_v34 = vld [vmem:[%s719_s4] ss:$0 sm:$0xff] (!%p189_p2) }
   0xd   : > { %s722_s22 = smov (!%p217_p3, %s485_s22), 3 }
   0xe   : > { %s486_s10 = sshll.u32 %s722_s22, 3  ;;  %563 = vmatpush3.bf16.msra.mxu1 %v560_v6 }
   0xf   : > { %s220_s13 = scalar_lea.vmem %s715_s0, %s486_s10  ;;  %565 = vmatprep.subr.bf16.mxu1 %v564_v9  ;;  %s226_s19 = scalar_lea.vmem %s720_s5, %s486_s10 }
  0x10   : > { %v228_v12 = vld [vmem:[%s220_s13] sm:$0xff]  ;;  %v229_v13 = vld [vmem:[%s220_s13 + $0x8] sm:$0xff] }
  0x11   : > { %518 = vmatprep.mubr.msk.f32.mxu0 %vm238_vm0, %v228_v12 }
  0x12   : > { %519 = vmatmul.mubr.msk.f32.vlgmr.msra.gmra.mrb[0].mxu0 %vm238_vm0, %v229_v13  ;;  %567 = vmatpush3.bf16.msra.mxu1 %v564_v9 }
  0x13   : > { %569 = vmatprep.subr.bf16.mxu1 %v568_v14 }
  0x16   : > { %571 = vmatpush3.bf16.msra.mxu1 %v568_v14 }
  0x17   : > { %573 = vmatprep.subr.bf16.mxu1 %v572_v17 }
  0x1a   : > { %575 = vmatpush3.bf16.msra.mxu1 %v572_v17 }
  0x1b   : > { %577 = vmatprep.subr.bf16.mxu1 %v576_v20 }
  0x1e   : > { %579 = vmatpush3.bf16.msra.mxu1 %v576_v20 }
  0x1f   : > { %581 = vmatprep.subr.bf16.mxu1 %v580_v23 }
  0x22   : > { %583 = vmatpush3.bf16.msra.mxu1 %v580_v23 }
  0x23   : > { %585 = vmatprep.subr.bf16.mxu1 %v584_v26 }
  0x26   : > { %587 = vmatpush3.bf16.msra.mxu1 %v584_v26 }
  0xe5   : > { %v520_v28 = vpop.f32.mrb[0].mxu0 }
  0xe6   : > { %v317_v29 = vadd.f32 %v520_v28, %v489_v27  ;;  %v311_v30 = vpop.f32.mrb[1].mxu0 }
  0xe7   : > { %v312_v31 = vadd.f32 %v489_v27, %v311_v30 }
  0xe8   : > { %v321_v33 = vmax.f32 %v317_v29, 0.0 }
  0xe9   : > { %v320_v32 = vmax.f32 %v312_v31, 0.0 }
  0xeb   : > { %553 = vmatprep.mubr.f32.mxu1 %v320_v32 }
  0xec   : > { %554 = vmatmul.mubr.f32.vlgmr.msra.gmra.mrb[0].mxu1 %v321_v33 }
 0x1bf   : > { %v555_v35 = vpop.f32.mrb[0].mxu1 }
 0x1c0   : > { %v417_v36 = vadd.f32 %v555_v35, %v492_v34  ;;  %v411_v37 = vpop.f32.mrb[1].mxu1 }
 0x1c1   : > { %v412_v38 = vadd.f32 %v492_v34, %v411_v37 }
 0x1c2   : > { %v421_v40 = vmax.f32 %v417_v36, 0.0 }
 0x1c3   : > { %v420_v39 = vmax.f32 %v412_v38, 0.0 }
 0x1c4   : > { %423 = vst [vmem:[%s226_s19 + $0x8] sm:$0xff] %v421_v40 }
 0x1c5   : > { %422 = vst [vmem:[%s226_s19] sm:$0xff] %v420_v39 }
 0x1c6 PF: > { %s15_s18 = sadd.s32 1, %s602_s18  }
 0x1c7   : > { %p12_p4 = scmp.ge.s32.totalorder %s15_s18, 4  }
 0x1c9   :  { %14 = sbr.rel (!%p12_p4) target bundleno = 1 (0x1), region = 70 }

</bundles_post_ra>
